<compile_context>
chip_gen: v7x
topology: tpu7x:2x2x1
jax: 0.10.0
libtpu: 0.0.40
codegen_flags: <defaults>
</compile_context>

<pallas_src>
import jax
import jax.numpy as jnp
from jax import lax
from jax.experimental import pallas as pl
from jax.experimental.pallas import tpu as pltpu


POOL_DTYPE = jnp.bfloat16   # exact for max pooling; use jnp.float32 on v5e if preferred


def _resnet_init_block_kernel(xs_ref, w_ref, scale_ref, shift_ref, o_ref):
    # xs_ref   : (1, RS, Wp, 128) bf16  dx-expanded / even-odd packed s2d input band
    # w_ref    : (256, Cp)        bf16  fused 7x7/s2 conv weight (zero padded)
    # scale_ref: (1, Cp) f32, shift_ref: (1, Cp) f32   folded eval-mode BatchNorm
    # o_ref    : (1, T, Wp, Cp)   bf16  pooled output tile (T pooled rows)
    _, RS, Wp, _ = xs_ref.shape
    Cp = w_ref.shape[1]
    T = o_ref.shape[1]
    Rc = RS - 3                       # conv rows in this tile = 2*T + 1 (1-row top halo)

    xs = xs_ref[0]                    # (RS, Wp, 128)
    w = w_ref[...]                    # (256, Cp)
    scale = scale_ref[0]
    shift = shift_ref[0]

    def conv_bn_relu(lane_lo):
        # 4 dy taps: full-width leading-dim slices, concatenated at 64-lane offsets.
        pieces = [xs[dy:dy + Rc, :, lane_lo:lane_lo + 64] for dy in range(4)]
        patches = jnp.concatenate(pieces, axis=-1)              # (Rc, Wp, 256)
        y = jnp.dot(patches.reshape(Rc * Wp, 4 * 64), w,
                    preferred_element_type=jnp.float32)         # (Rc*Wp, Cp) f32
        y = jnp.maximum(y * scale + shift, 0.0)                 # BN + ReLU (f32)
        return y.astype(POOL_DTYPE).reshape(Rc, Wp, Cp)

    y_e = conv_bn_relu(0)             # conv columns 2b     (b = 0..Wp-1)
    y_o = conv_bn_relu(64)            # conv columns 2b + 1

    # ---- MaxPool 3x3 / stride 2 / pad 1 ------------------------------------
    # width:  out col b = max(conv[2b-1], conv[2b], conv[2b+1])
    #                   = max(odd[b-1], even[b], odd[b]),  odd[-1] := 0
    # (post-ReLU values are >= 0, so 0 is an exact stand-in for the -inf pad)
    zero_col = jnp.zeros((Rc, 1, Cp), POOL_DTYPE)
    yo_prev = jnp.concatenate([zero_col, y_o[:, :Wp - 1, :]], axis=1)
    wpool = jnp.maximum(jnp.maximum(y_e, y_o), yo_prev)         # (Rc, Wp, Cp)

    # The first row-tile's local conv row 0 is the (non-existent) conv row -1:
    # replace it with 0 (exact pool padding, see above).
    row0 = jnp.where(pl.program_id(1) == 0,
                     jnp.zeros_like(wpool[0:1]), wpool[0:1])
    wpool = jnp.concatenate([row0, wpool[1:]], axis=0)

    # height: out row a = max over local conv rows {2a, 2a+1, 2a+2}
    # (leading-dim reshape trick -- no sublane work)
    a01 = wpool[0:2 * T].reshape(T, 2, Wp, Cp)
    a12 = wpool[1:2 * T + 1].reshape(T, 2, Wp, Cp)
    out = jnp.maximum(jnp.maximum(a01[:, 0], a01[:, 1]), a12[:, 1])   # (T, Wp, Cp)

    o_ref[0] = out.astype(o_ref.dtype)


def resnet_init_block_forward(x_nchw, w_oihw, gamma, beta, mean, var,
                              eps=1e-5, tile_hp=8):
    N, Cin, H, W = x_nchw.shape
    C = w_oihw.shape[0]
    assert Cin == 3 and w_oihw.shape[1:] == (3, 7, 7)
    assert H % 4 == 0 and W % 4 == 0          # W % 32 == 0 is the lane/sublane-friendly case
    Hc, Wc = H // 2, W // 2                   # conv output (k=7, s=2, p=3)
    Hp, Wp = Hc // 2, Wc // 2                 # maxpool output (k=3, s=2, p=1)
    Cp = ((C + 127) // 128) * 128             # channels padded to full 128-lane tiles

    # pooled-row tile: largest divisor of Hp that is <= tile_hp
    T = min(tile_hp, Hp)
    while Hp % T:
        T -= 1
    Tn = Hp // T
    Rc = 2 * T + 1                            # conv rows per tile (incl. 1-row top halo)
    RS = Rc + 3                               # s2d input rows per tile (4 dy taps)

    # ---- wrapper layout plumbing (pure data movement, runs once in XLA) ----
    # NCHW -> NHWC, conv pad 3, space-to-depth(2):
    #   xs[n, a, b, (p*2+q)*3 + c] = x_pad[n, 2a+p, 2b+q, c]
    x = jnp.transpose(x_nchw, (0, 2, 3, 1))
    xp = jnp.pad(x, ((0, 0), (3, 3), (3, 3), (0, 0)))
    HS, WS = Hc + 3, Wc + 3
    xs12 = xp.reshape(N, HS, 2, WS, 2, Cin).transpose(0, 1, 3, 2, 4, 5)
    xs12 = xs12.reshape(N, HS, WS, 4 * Cin).astype(jnp.bfloat16)

    # per-tap channels 12 -> 16 (K: 192 -> 256), dx pre-expansion (4 taps),
    # even/odd conv-column packing -> a fully lane-dense 128-wide last dim,
    # one zero halo row on top, then per-tile row bands (plain disjoint blocks).
    xs16 = jnp.pad(xs12, ((0, 0), (0, 0), (0, 0), (0, 16 - 4 * Cin)))
    xs_dx = jnp.stack([xs16[:, :, dx:dx + Wc, :] for dx in range(4)], axis=3)
    xs_eo = xs_dx.reshape(N, HS, Wp, 128)     # [.., b, e*64 + dx*16 + cs] = col 2b+e, tap dx
    xs_pad = jnp.pad(xs_eo, ((0, 0), (1, 0), (0, 0), (0, 0)))     # conv-row -1 halo
    xs_tiles = jnp.stack(
        [xs_pad[:, 2 * T * t:2 * T * t + RS] for t in range(Tn)],
        axis=1).reshape(N * Tn, RS, Wp, 128)

    # ---- fused conv weight: OIHW (C,3,7,7) -> (256, Cp), feature order
    #      dy*64 + dx*16 + ((p*2+q)*3 + c)  (matches the kernel's patch concat)
    w_hwio = jnp.transpose(w_oihw, (2, 3, 1, 0)).astype(jnp.float32)
    w8 = jnp.pad(w_hwio, ((0, 1), (0, 1), (0, 0), (0, 0)))        # 7 -> 8 taps (zeros)
    w8 = w8.reshape(4, 2, 4, 2, Cin, C).transpose(0, 2, 1, 3, 4, 5)   # (dy,dx,p,q,c,o)
    w8 = w8.reshape(4, 4, 4 * Cin, C)
    w8 = jnp.pad(w8, ((0, 0), (0, 0), (0, 16 - 4 * Cin), (0, Cp - C)))
    w_fused = w8.reshape(4 * 4 * 16, Cp).astype(jnp.bfloat16)     # (256, Cp)

    # ---- fold eval-mode BatchNorm into per-channel scale / shift ------------
    scale = gamma / jnp.sqrt(var + eps)
    shift = beta - mean * scale
    scale = jnp.pad(scale, (0, Cp - C)).reshape(1, Cp).astype(jnp.float32)
    shift = jnp.pad(shift, (0, Cp - C)).reshape(1, Cp).astype(jnp.float32)

    out = pl.pallas_call(
        _resnet_init_block_kernel,
        out_shape=jax.ShapeDtypeStruct((N, Hp, Wp, Cp), jnp.bfloat16),
        grid_spec=pltpu.PrefetchScalarGridSpec(
            num_scalar_prefetch=0,
            grid=(N, Tn),
            in_specs=[
                pl.BlockSpec((1, RS, Wp, 128), lambda n, t: (n * Tn + t, 0, 0, 0)),
                pl.BlockSpec((4 * 4 * 16, Cp), lambda n, t: (0, 0)),   # weight (resident)
                pl.BlockSpec((1, Cp), lambda n, t: (0, 0)),            # bn scale
                pl.BlockSpec((1, Cp), lambda n, t: (0, 0)),            # bn shift
            ],
            out_specs=pl.BlockSpec((1, T, Wp, Cp), lambda n, t: (n, t, 0, 0)),
        ),
        compiler_params=pltpu.CompilerParams(
            dimension_semantics=("parallel", "parallel")),
    )(xs_tiles, w_fused, scale, shift)

    # drop channel padding, back to PyTorch NCHW / f32
    return jnp.transpose(out[..., :C].astype(jnp.float32), (0, 3, 1, 2))


def _ref_forward(x_nchw, w_oihw, gamma, beta, mean, var, eps=1e-5):
    x = jnp.transpose(x_nchw, (0, 2, 3, 1))
    w = jnp.transpose(w_oihw, (2, 3, 1, 0))
    y = lax.conv_general_dilated(x, w, window_strides=(2, 2),
                                 padding=((3, 3), (3, 3)),
                                 dimension_numbers=('NHWC', 'HWIO', 'NHWC'),
                                 precision=lax.Precision.HIGHEST)
    y = (y - mean) * (gamma / jnp.sqrt(var + eps)) + beta
    y = jnp.maximum(y, 0.0)
    y = lax.reduce_window(y, -jnp.inf, lax.max,
                          window_dimensions=(1, 3, 3, 1),
                          window_strides=(1, 2, 2, 1),
                          padding=((0, 0), (1, 1), (1, 1), (0, 0)))
    return jnp.transpose(y, (0, 3, 1, 2))


if __name__ == "__main__":
    # Small shapes consistent with the module: in_channels fixed at 3,
    # inplanes = 64 (standard ResNet stem), spatial 32x32, batch 2.
    N, H, W = 2, 32, 32
    inplanes = 64

    key = jax.random.PRNGKey(0)
    k = jax.random.split(key, 6)
    x = jax.random.normal(k[0], (N, 3, H, W), jnp.float32)                 # NCHW input
    w = 0.1 * jax.random.normal(k[1], (inplanes, 3, 7, 7), jnp.float32)    # OIHW weight
    gamma = 1.0 + 0.1 * jax.random.normal(k[2], (inplanes,), jnp.float32)
    beta = 0.1 * jax.random.normal(k[3], (inplanes,), jnp.float32)
    mean = 0.1 * jax.random.normal(k[4], (inplanes,), jnp.float32)
    var = jax.random.uniform(k[5], (inplanes,), jnp.float32, 0.5, 1.5)

    out = resnet_init_block_forward(x, w, gamma, beta, mean, var)
    out = jax.block_until_ready(out)

    # Reference with bf16-rounded conv operands (the kernel feeds bf16 to the
    # MXU, accumulates in f32 and stores a bf16 result).
    xb = x.astype(jnp.bfloat16).astype(jnp.float32)
    wb = w.astype(jnp.bfloat16).astype(jnp.float32)
    ref = _ref_forward(xb, wb, gamma, beta, mean, var)

    assert out.shape == (N, inplanes, H // 4, W // 4), out.shape
    err = float(jnp.max(jnp.abs(out - ref)))
    assert jnp.allclose(out, ref, rtol=2e-2, atol=2e-2), err

    print("KERNEL_OK")
</pallas_src>

<mosaic_0001>
module attributes {stable_mosaic.version = 11 : i64} {
  func.func @_resnet_init_block_kernel(%arg0: i32, %arg1: i32, %arg2: memref<1x20x8x128xbf16, #tpu.memory_space<vmem>>, %arg3: memref<256x128xbf16, #tpu.memory_space<vmem>>, %arg4: memref<1x128xf32, #tpu.memory_space<vmem>>, %arg5: memref<1x128xf32, #tpu.memory_space<vmem>>, %arg6: memref<1x8x8x128xbf16, #tpu.memory_space<vmem>>) attributes {dimension_semantics = [#tpu.dimension_semantics<parallel>, #tpu.dimension_semantics<parallel>], iteration_bounds = array<i64: 2, 1>, scalar_prefetch = 0 : i64, scratch_operands = 0 : i64, tpu.core_type = #tpu.core_type<tc>, window_params = [{transform_indices = @transform_0, window_bounds = array<i64: 1, 20, 8, 128>}, {pipeline_mode = #tpu.pipeline_mode<synchronous>, transform_indices = @transform_1, window_bounds = array<i64: 256, 128>}, {pipeline_mode = #tpu.pipeline_mode<synchronous>, transform_indices = @transform_2, window_bounds = array<i64: 1, 128>}, {pipeline_mode = #tpu.pipeline_mode<synchronous>, transform_indices = @transform_3, window_bounds = array<i64: 1, 128>}, {transform_indices = @transform_4, window_bounds = array<i64: 1, 8, 8, 128>}]} {
    %c0 = arith.constant 0 : index
    %c0_0 = arith.constant 0 : index
    %c0_1 = arith.constant 0 : index
    %c0_2 = arith.constant 0 : index
    %0 = vector.load %arg2[%c0, %c0_0, %c0_1, %c0_2] : memref<1x20x8x128xbf16, #tpu.memory_space<vmem>>, vector<1x20x8x128xbf16>
    %1 = vector.shape_cast %0 : vector<1x20x8x128xbf16> to vector<20x8x128xbf16>
    %c0_3 = arith.constant 0 : index
    %c0_4 = arith.constant 0 : index
    %2 = vector.load %arg3[%c0_3, %c0_4] : memref<256x128xbf16, #tpu.memory_space<vmem>>, vector<256x128xbf16>
    %c0_5 = arith.constant 0 : index
    %c0_6 = arith.constant 0 : index
    %3 = vector.load %arg4[%c0_5, %c0_6] : memref<1x128xf32, #tpu.memory_space<vmem>>, vector<1x128xf32>
    %4 = vector.shape_cast %3 : vector<1x128xf32> to vector<128xf32>
    %c0_7 = arith.constant 0 : index
    %c0_8 = arith.constant 0 : index
    %5 = vector.load %arg5[%c0_7, %c0_8] : memref<1x128xf32, #tpu.memory_space<vmem>>, vector<1x128xf32>
    %6 = vector.shape_cast %5 : vector<1x128xf32> to vector<128xf32>
    %7 = vector.extract_strided_slice %1 {offsets = [0, 0, 0], sizes = [17, 8, 64], strides = [1, 1, 1]} : vector<20x8x128xbf16> to vector<17x8x64xbf16>
    %8 = vector.extract_strided_slice %1 {offsets = [1, 0, 0], sizes = [17, 8, 64], strides = [1, 1, 1]} : vector<20x8x128xbf16> to vector<17x8x64xbf16>
    %9 = vector.extract_strided_slice %1 {offsets = [2, 0, 0], sizes = [17, 8, 64], strides = [1, 1, 1]} : vector<20x8x128xbf16> to vector<17x8x64xbf16>
    %10 = vector.extract_strided_slice %1 {offsets = [3, 0, 0], sizes = [17, 8, 64], strides = [1, 1, 1]} : vector<20x8x128xbf16> to vector<17x8x64xbf16>
    %11 = tpu.concatenate %7, %8, %9, %10 in 2 : vector<17x8x64xbf16>, vector<17x8x64xbf16>, vector<17x8x64xbf16>, vector<17x8x64xbf16> -> vector<17x8x256xbf16>
    %12 = vector.shape_cast %11 : vector<17x8x256xbf16> to vector<136x256xbf16>
    %cst = arith.constant dense<0.000000e+00> : vector<136x128xf32>
    %13 = tpu.matmul %12, %2, %cst {dimension_numbers = #tpu.dot_dimension_numbers<[1], [0], [0], [1], [0, 0, 1, 1], [], []>} : vector<136x256xbf16>, vector<256x128xbf16>, vector<136x128xf32> -> vector<136x128xf32>
    %14 = vector.shape_cast %4 : vector<128xf32> to vector<1x128xf32>
    %15 = vector.broadcast %14 : vector<1x128xf32> to vector<136x128xf32>
    %16 = arith.mulf %13, %15 : vector<136x128xf32>
    %17 = vector.shape_cast %6 : vector<128xf32> to vector<1x128xf32>
    %18 = vector.broadcast %17 : vector<1x128xf32> to vector<136x128xf32>
    %19 = arith.addf %16, %18 : vector<136x128xf32>
    %cst_9 = arith.constant 0.000000e+00 : f32
    %20 = vector.broadcast %cst_9 : f32 to vector<136x128xf32>
    %21 = arith.maximumf %19, %20 : vector<136x128xf32>
    %22 = arith.truncf %21 : vector<136x128xf32> to vector<136x128xbf16>
    %23 = vector.shape_cast %22 : vector<136x128xbf16> to vector<17x8x128xbf16>
    %24 = vector.extract_strided_slice %1 {offsets = [0, 0, 64], sizes = [17, 8, 64], strides = [1, 1, 1]} : vector<20x8x128xbf16> to vector<17x8x64xbf16>
    %25 = vector.extract_strided_slice %1 {offsets = [1, 0, 64], sizes = [17, 8, 64], strides = [1, 1, 1]} : vector<20x8x128xbf16> to vector<17x8x64xbf16>
    %26 = vector.extract_strided_slice %1 {offsets = [2, 0, 64], sizes = [17, 8, 64], strides = [1, 1, 1]} : vector<20x8x128xbf16> to vector<17x8x64xbf16>
    %27 = vector.extract_strided_slice %1 {offsets = [3, 0, 64], sizes = [17, 8, 64], strides = [1, 1, 1]} : vector<20x8x128xbf16> to vector<17x8x64xbf16>
    %28 = tpu.concatenate %24, %25, %26, %27 in 2 : vector<17x8x64xbf16>, vector<17x8x64xbf16>, vector<17x8x64xbf16>, vector<17x8x64xbf16> -> vector<17x8x256xbf16>
    %29 = vector.shape_cast %28 : vector<17x8x256xbf16> to vector<136x256xbf16>
    %cst_10 = arith.constant dense<0.000000e+00> : vector<136x128xf32>
    %30 = tpu.matmul %29, %2, %cst_10 {dimension_numbers = #tpu.dot_dimension_numbers<[1], [0], [0], [1], [0, 0, 1, 1], [], []>} : vector<136x256xbf16>, vector<256x128xbf16>, vector<136x128xf32> -> vector<136x128xf32>
    %31 = vector.shape_cast %4 : vector<128xf32> to vector<1x128xf32>
    %32 = vector.broadcast %31 : vector<1x128xf32> to vector<136x128xf32>
    %33 = arith.mulf %30, %32 : vector<136x128xf32>
    %34 = vector.shape_cast %6 : vector<128xf32> to vector<1x128xf32>
    %35 = vector.broadcast %34 : vector<1x128xf32> to vector<136x128xf32>
    %36 = arith.addf %33, %35 : vector<136x128xf32>
    %cst_11 = arith.constant 0.000000e+00 : f32
    %37 = vector.broadcast %cst_11 : f32 to vector<136x128xf32>
    %38 = arith.maximumf %36, %37 : vector<136x128xf32>
    %39 = arith.truncf %38 : vector<136x128xf32> to vector<136x128xbf16>
    %40 = vector.shape_cast %39 : vector<136x128xbf16> to vector<17x8x128xbf16>
    %cst_12 = arith.constant 0.000000e+00 : bf16
    %41 = vector.broadcast %cst_12 : bf16 to vector<17x1x128xbf16>
    %42 = vector.extract_strided_slice %40 {offsets = [0, 0, 0], sizes = [17, 7, 128], strides = [1, 1, 1]} : vector<17x8x128xbf16> to vector<17x7x128xbf16>
    %43 = tpu.concatenate %41, %42 in 1 : vector<17x1x128xbf16>, vector<17x7x128xbf16> -> vector<17x8x128xbf16>
    %44 = arith.maximumf %23, %40 : vector<17x8x128xbf16>
    %45 = arith.maximumf %44, %43 : vector<17x8x128xbf16>
    %c0_i32 = arith.constant 0 : i32
    %46 = arith.cmpi eq, %arg1, %c0_i32 : i32
    %cst_13 = arith.constant 0.000000e+00 : bf16
    %47 = vector.broadcast %cst_13 : bf16 to vector<1x8x128xbf16>
    %48 = vector.extract_strided_slice %45 {offsets = [0, 0, 0], sizes = [1, 8, 128], strides = [1, 1, 1]} : vector<17x8x128xbf16> to vector<1x8x128xbf16>
    %49 = arith.select %46, %47, %48 : vector<1x8x128xbf16>
    %50 = vector.extract_strided_slice %45 {offsets = [1, 0, 0], sizes = [16, 8, 128], strides = [1, 1, 1]} : vector<17x8x128xbf16> to vector<16x8x128xbf16>
    %51 = tpu.concatenate %49, %50 in 0 : vector<1x8x128xbf16>, vector<16x8x128xbf16> -> vector<17x8x128xbf16>
    %52 = vector.extract_strided_slice %51 {offsets = [0, 0, 0], sizes = [16, 8, 128], strides = [1, 1, 1]} : vector<17x8x128xbf16> to vector<16x8x128xbf16>
    %53 = vector.shape_cast %52 : vector<16x8x128xbf16> to vector<8x2x8x128xbf16>
    %54 = vector.extract_strided_slice %51 {offsets = [1, 0, 0], sizes = [16, 8, 128], strides = [1, 1, 1]} : vector<17x8x128xbf16> to vector<16x8x128xbf16>
    %55 = vector.shape_cast %54 : vector<16x8x128xbf16> to vector<8x2x8x128xbf16>
    %56 = vector.extract_strided_slice %53 {offsets = [0, 0, 0, 0], sizes = [8, 1, 8, 128], strides = [1, 1, 1, 1]} : vector<8x2x8x128xbf16> to vector<8x1x8x128xbf16>
    %57 = vector.shape_cast %56 : vector<8x1x8x128xbf16> to vector<8x8x128xbf16>
    %58 = vector.extract_strided_slice %53 {offsets = [0, 1, 0, 0], sizes = [8, 1, 8, 128], strides = [1, 1, 1, 1]} : vector<8x2x8x128xbf16> to vector<8x1x8x128xbf16>
    %59 = vector.shape_cast %58 : vector<8x1x8x128xbf16> to vector<8x8x128xbf16>
    %60 = arith.maximumf %57, %59 : vector<8x8x128xbf16>
    %61 = vector.extract_strided_slice %55 {offsets = [0, 1, 0, 0], sizes = [8, 1, 8, 128], strides = [1, 1, 1, 1]} : vector<8x2x8x128xbf16> to vector<8x1x8x128xbf16>
    %62 = vector.shape_cast %61 : vector<8x1x8x128xbf16> to vector<8x8x128xbf16>
    %63 = arith.maximumf %60, %62 : vector<8x8x128xbf16>
    %c0_14 = arith.constant 0 : index
    %c0_15 = arith.constant 0 : index
    %c0_16 = arith.constant 0 : index
    %c0_17 = arith.constant 0 : index
    %64 = vector.load %arg6[%c0_14, %c0_15, %c0_16, %c0_17] : memref<1x8x8x128xbf16, #tpu.memory_space<vmem>>, vector<1x8x8x128xbf16>
    %65 = vector.shape_cast %64 : vector<1x8x8x128xbf16> to vector<8x8x128xbf16>
    %66 = vector.shape_cast %63 : vector<8x8x128xbf16> to vector<1x8x8x128xbf16>
    tpu.vector_store %arg6[%c0_14, %c0_15, %c0_16, %c0_17], %66 {strides = array<i32>} : memref<1x8x8x128xbf16, #tpu.memory_space<vmem>>, vector<1x8x8x128xbf16>,
    return
  }
  func.func @transform_0(%arg0: i32, %arg1: i32) -> (i32, i32, i32, i32) {
    %c1_i32 = arith.constant 1 : i32
    %0 = arith.muli %arg0, %c1_i32 : i32
    %1 = arith.addi %0, %arg1 : i32
    %c0_i32 = arith.constant 0 : i32
    %c0_i32_0 = arith.constant 0 : i32
    %c0_i32_1 = arith.constant 0 : i32
    %c0_i32_2 = arith.constant 0 : i32
    return %1, %c0_i32, %c0_i32_0, %c0_i32_1 : i32, i32, i32, i32
  }
  func.func @transform_1(%arg0: i32, %arg1: i32) -> (i32, i32) {
    %c0_i32 = arith.constant 0 : i32
    %c0_i32_0 = arith.constant 0 : i32
    %c0_i32_1 = arith.constant 0 : i32
    return %c0_i32, %c0_i32_0 : i32, i32
  }
  func.func @transform_2(%arg0: i32, %arg1: i32) -> (i32, i32) {
    %c0_i32 = arith.constant 0 : i32
    %c0_i32_0 = arith.constant 0 : i32
    %c0_i32_1 = arith.constant 0 : i32
    return %c0_i32, %c0_i32_0 : i32, i32
  }
  func.func @transform_3(%arg0: i32, %arg1: i32) -> (i32, i32) {
    %c0_i32 = arith.constant 0 : i32
    %c0_i32_0 = arith.constant 0 : i32
    %c0_i32_1 = arith.constant 0 : i32
    return %c0_i32, %c0_i32_0 : i32, i32
  }
  func.func @transform_4(%arg0: i32, %arg1: i32) -> (i32, i32, i32, i32) {
    %c0_i32 = arith.constant 0 : i32
    %c0_i32_0 = arith.constant 0 : i32
    %c0_i32_1 = arith.constant 0 : i32
    return %arg0, %arg1, %c0_i32, %c0_i32_0 : i32, i32, i32, i32
  }
}

</mosaic_0001>

<bundles_post_ra>
// kernel: tpu_custom_call.1
= control target key start
LH: loop header
LB: loop body
LE: loop exit
PB: predicated region body
PF: predicated region fallthrough
CT: control target
= control target key end

     0   :  { %9 = vsyncpa [#allocation3], 0  ;;  %s2646_s0 = inlined_call_operand.hbm [shape: bf16[2,20,8,128], index: 0, kind: input, shape index: {}]   ;;  %s2647_s1 = inlined_call_operand.hbm [shape: bf16[256,128], index: 1, kind: input, shape index: {}]   ;;  %s2648_s2 = inlined_call_operand.vmem [shape: f32[1,128], index: 2, kind: input, shape index: {}]   ;;  %s2649_s3 = inlined_call_operand.vmem [shape: f32[1,128], index: 3, kind: input, shape index: {}]   ;;  %s2650_s4 = inlined_call_operand.hbm [shape: bf16[2,8,8,128], index: 4, kind: output, shape index: {}]  }
   0x1   :  { %11 = vsyncpa [#allocation3 + $0x1], 0 }
   0x2   :  { %12 = vsyncpa [#allocation6], 0 }
   0x3   :  { %13 = vsyncpa [#allocation4], 0 }
   0x4   :  { %15 = vsyncpa [#allocation4 + $0x1], 0  ;;  %s2096_s15 = smov 0   ;;  %s2098_s16 = smov 0  }
   0x5   :  { %s2100_s17 = smov 0   ;;  %s2102_s18 = smov 0  }
   0x6   :  { %s2104_s19 = smov 0   ;;  %s2106_s20 = smov 0  }
   0x7 LB: > { %s1490_s21 = sadd.s32 4294967295, %s2061_s20   ;;  %s1491_s22 = sadd.s32 4294967294, %s2061_s20   ;;  %s2061_s20 = sphi %s2106_s20, %s21_s20   ;;  %s2057_s19 = sphi %s2104_s19, %s2675_s19   ;;  %s2053_s18 = sphi %s2102_s18, %s2674_s18   ;;  %s2049_s17 = sphi %s2100_s17, %s2673_s17   ;;  %s2045_s16 = sphi %s2098_s16, %s2672_s16   ;;  %s2041_s15 = sphi %s2096_s15, %s2671_s15  }
   0x8   : > { %p55_p0 = scmp.ne.s32.totalorder %s2045_s16, %s2041_s15  ;;  %p2130_p1 = scmp.eq.s32.totalorder %s1490_s21, 0 }
   0x9   : > { %p2134_p2 = scmp.eq.s32.totalorder %s1490_s21, 1  ;;  %p150_p3 = scmp.eq.s32.totalorder %s1491_s22, 1 }
   0xa   : > { %s2655_s23 = scalar_select %p2130_p1, 1, 0 }
   0xb   : > { %s2656_s24 = scalar_select %p2134_p2, 1, 0 }
   0xc   : > { %p2140_p4 = por %p2130_p1, %p55_p0  ;;  %p1492_p5 = scmp.ge.s32.totalorder %s2061_s20, 1 }
   0xd   : > { %p2145_p6 = por %p150_p3, %p55_p0  ;;  %p157_p7 = scmp.lt.s32.totalorder %s2061_s20, 3 }
   0xe   : > { %s2657_s25 = scalar_select %p2140_p4, 1, 0 }
   0xf   : > { %s2658_s26 = scalar_select %p2145_p6, 1, 0 }
  0x10   : > { %p2150_p8 = pnand %p1492_p5, %p157_p7  ;;  %s2063_s28 = smov [#allocation5]  }
  0x11   : > { %s169_s29 = sshll.u32 %s2063_s28, 4  ;;  %s33_s5 = sadd.s32 1, %s2057_s19  ;;  %s170_s29 = int_to_ptr.vmem [resolvable:$true] %s169_s29 }
  0x12   : > { %s2659_s27 = scalar_select %p2150_p8, 1, 0 }
  0x13   : > { %p1811_p9 = pneg %p2150_p8  ;;  %s1917_s8 = scalar_lea.hbm %s2647_s1, 2048 }
  0x14   : > { %p1918_p12 = scmp.ne.s32.totalorder %s2647_s1, %s1917_s8  ;;  %p1924_p5 = scmp.lt.u32.totalorder %s1917_s8, %s2647_s1 }
  0x15   : > { %p2159_p11 = pnand %p1811_p9, %p2130_p1 }
  0x17   : > { %p1919_p13 = pneg %p2159_p11 }
  0x19   : > { %p1920_p0 = pnand %p1919_p13, %p1918_p12 }
  0x1b   : > { %p1921_p3 = pneg %p1920_p0 }
  0x1d   : > { %p1926_p7 = pnand %p1924_p5, %p1921_p3 }
  0x1f   : > { %1929 = shalt.err (!%p1926_p7)
}
  0x20   : > { %s1930_s13 = scalar_lea.vmem %s170_s29, 2048  ;;  %p1938_p1 = scmp.lt.s32.totalorder %s170_s29, %s170_s29 }
  0x21   : > { %p1931_p9 = scmp.ne.s32.totalorder %s170_s29, %s1930_s13  ;;  %p1939_p4 = scmp.lt.s32.totalorder %s1930_s13, %s1930_s13 }
  0x23   : > { %p1933_p10 = pnand %p1931_p9, %p1919_p13  ;;  %p1940_p8 = por %p1939_p4, %p1938_p1 }
  0x25   : > { %p1934_p6 = pneg %p1933_p10 }
  0x27   : > { %p1941_p2 = pnand %p1940_p8, %p1934_p6 }
  0x29   : > { %1944 = shalt.err (!%p1941_p2)
}
  0x2a   : > { %s2064_s14 = smov 64   ;;  %s2065_s21 = smov 4  }
  0x2b   : > { %1814 = dma.hbm_to_vmem [thread:$0]  (!%p2159_p11), %s2647_s1, 2048, %s170_s29, [#allocation6], %s2064_s14, %s2064_s14, %s2065_s21  }
  0x2c   : > { %p35_p1 = scmp.ge.s32.totalorder %s33_s5, 2  ;;  %s42_s6 = sadd.s32 1, %s2049_s17 }
  0x2d   : > { %p49_p2 = scmp.ne.s32.totalorder %s2049_s17, %s2045_s16  ;;  %p50_p4 = scmp.eq.s32.totalorder %s2061_s20, 0 }
  0x2e   : > { %s2677_s5 = smov (%p35_p1, %s33_s5), 0  ;;  %p2661_p8 = scmp.ne.s32.totalorder %s2656_s24, 0 }
  0x2f   : > { %p51_p6 = por %p50_p4, %p49_p2  ;;  %s39_s30 = ssub.s32 %s2057_s19, %s2677_s5 }
  0x30   : > { %p2191_p10 = por %p2661_p8, %p49_p2  ;;  %p1824_p12 = scmp.lt.s32.totalorder %s2061_s20, 2 }
  0x31   : > { %p40_p13 = scmp.eq.s32.totalorder %s39_s30, 0  ;;  %s189_s8 = sand.u32 1, %s2049_s17  }
  0x32   : > { %s1800_s9 = smul.u32 80, %s189_s8  ;;  %p2203_p11 = pnand %p1824_p12, %p51_p6 }
  0x33   : > { %s2200_s10 = scalar_select %p40_p13, %s2049_s17, %s42_s6  }
  0x34   : > { %s1801_s29 = smul.u32 1280, %s2057_s19  ;;  %s193_s11 = scalar_lea.vmem [#allocation2], %s1800_s9 }
  0x35   : > { %s201_s12 = sshll.u32 %s193_s11, 4  ;;  %s2214_s6 = scalar_lea.sflag [#allocation3], %s189_s8  ;;  %s2212_s12 = int_to_ptr.vmem [resolvable:$true] %s201_s12 }
  0x36   : > { %s2210_s28 = scalar_lea.hbm %s2646_s0, %s1801_s29  ;;  %p1947_p3 = pneg %p2203_p11 }
  0x37   : > { %s1945_s30 = scalar_lea.hbm %s2210_s28, 1280  ;;  %s1950_s29 = scalar_lea.hbm %s2646_s0, 2560 }
  0x38   : > { %p1946_p0 = scmp.ne.s32.totalorder %s2210_s28, %s1945_s30  ;;  %p1951_p9 = scmp.lt.u32.totalorder %s2210_s28, %s2646_s0 }
  0x39   : > { %p1952_p1 = scmp.lt.u32.totalorder %s1950_s29, %s1945_s30  ;;  %p1954_p4 = scmp.lt.u32.totalorder %s1945_s30, %s2210_s28 }
  0x3a   : > { %p1948_p5 = pnand %p1947_p3, %p1946_p0 }
  0x3b   : > { %p1953_p2 = por %p1952_p1, %p1951_p9 }
  0x3c   : > { %p1949_p7 = pneg %p1948_p5 }
  0x3d   : > { %p1955_p6 = por %p1954_p4, %p1953_p2 }
  0x3f   : > { %p1956_p8 = pnand %p1955_p6, %p1949_p7 }
  0x41   : > { %1959 = shalt.err (!%p1956_p8)
}
  0x42   : > { %s1960_s8 = scalar_lea.vmem %s2212_s12, 1280  ;;  %s2066_s9 = smov [#allocation2]  }
  0x43   : > { %p1961_p12 = scmp.ne.s32.totalorder %s2212_s12, %s1960_s8  ;;  %s1965_s11 = sshll.u32 %s2066_s9, 4  ;;  %s1966_s11 = int_to_ptr.vmem [resolvable:$false] %s1965_s11 }
  0x44   : > { %s1967_s22 = scalar_lea.vmem %s1966_s11, 2560  ;;  %p1968_p5 = scmp.lt.s32.totalorder %s2212_s12, %s1966_s11 }
  0x45   : > { %p1963_p13 = pnand %p1961_p12, %p1947_p3  ;;  %p1969_p9 = scmp.lt.s32.totalorder %s1967_s22, %s1960_s8 }
  0x47   : > { %p1964_p0 = pneg %p1963_p13  ;;  %p1970_p1 = por %p1969_p9, %p1968_p5 }
  0x49   : > { %p1971_p2 = pnand %p1970_p1, %p1964_p0 }
  0x4b   : > { %1974 = shalt.err (!%p1971_p2)
}
  0x4c   : > { %1818 = dma.hbm_to_vmem [thread:$0]  (!%p2203_p11), %s2210_s28, 1280, %s2212_s12, %s2214_s6, %s2064_s14, %s2064_s14, %s2065_s21  }
  0x4d   : > { %p2664_p3 = scmp.ne.s32.totalorder %s2659_s27, 0 }
  0x4e   : > { %s2248_s30 = sand.u32 (!%p2664_p3), 1, %s2045_s16   ;;  %p2665_p7 = scmp.ne.s32.totalorder (!%p2664_p3), %s2657_s25, 0 }
  0x4f   : > { %213 = sbr.rel (%p2664_p3) target bundleno = 539 (0x21b), region = 36  ;;  %s216_s24 = scalar_lea.sflag (!%p2664_p3), [#allocation3], %s2248_s30 }
  0x50   : > { %s1802_s29 = smul.u32 (!%p2664_p3), 80, %s2248_s30 }
  0x52   : > { %s2252_s8 = scalar_lea.vmem (!%p2664_p3), [#allocation2], %s1802_s29 }
  0x56   : > { %2028 = dma.done.wait (%p2665_p7), %s216_s24, 1280  }
  0x57   : > { %2030 = vsyncadd (%p2665_p7), %s216_s24, 4294966016  ;;  %p2666_p11 = scmp.ne.s32.totalorder %s2655_s23, 0 }
  0x59   : > { %2032 = dma.done.wait (%p2666_p11), [#allocation6], 2048  }
  0x5a   : > { %2034 = vsyncadd (%p2666_p11), [#allocation6], 4294965248  ;;  %v2263_v0 = vld [vmem:[%s2252_s8 + $0x8] sm:$0xf]  ;;  %v2266_v1 = vld [vmem:[%s2252_s8 + $0x4] sm:$0xf] }
  0x5b   : > { %v2269_v2 = vld [vmem:[%s2252_s8 + $0xc] sm:$0xf]  ;;  %v1500_v3 = vcombine.low %v2263_v0, %v2263_v0  ;;  %v1499_v4 = vcombine.low %v2266_v1, %v2266_v1  ;;  %v2276_v5 = vld [vmem:[%s2252_s8] sm:$0xf]  ;;  %s2067_s23 = smov 64   ;;  %vm400_vm0 = vcmask 523264  }
  0x5c   : > { %v1501_v6 = vcombine.low %v2269_v2, %v2269_v2  ;;  %v1564_v7 = vcombine.low %v2276_v5, %v2276_v5  ;;  %v2285_v8 = vld [vmem:[%s2252_s8 + $0x10] sm:$0xf]  ;;  %v2288_v9 = vld [vmem:[%s2252_s8 + $0x14] sm:$0xf]  ;;  %v2291_v10 = vld [vmem:[%s2252_s8 + $0x18] sm:$0xf] }
  0x5d   : > { %358 = vrot.lane.b32.xlu0 %v1500_v3, %s2067_s23  ;;  %356 = vrot.lane.b32.xlu1 %v1499_v4, %s2067_s23  ;;  %v2294_v11 = vld [vmem:[%s2252_s8 + $0x1c] sm:$0xf]  ;;  %v1502_v12 = vcombine.low %v2285_v8, %v2285_v8  ;;  %v1503_v13 = vcombine.low %v2288_v9, %v2288_v9  ;;  %v1901_v14 = vld [vmem:[#allocation5 + $0x40] sm:$0xff]   ;;  %v1504_v19 = vcombine.low %v2291_v10, %v2291_v10  ;;  %v1905_v22 = vld [vmem:[#allocation5 + $0x50] sm:$0xff]   ;;  %vm1296_vm1 = vcmask 1040384   ;;  %s1498_s12 = sshll.u32 %s2248_s30, 5 }
  0x5e   : > { %v1902_v15 = vld [vmem:[#allocation5] sm:$0xff]   ;;  %1730 = vmatprep.subr.bf16.mxu1 %v1901_v14  ;;  %1660 = vmatprep.subr.bf16.mxu0 %v1901_v14  ;;  %v1903_v16 = vld [vmem:[#allocation5 + $0x48] sm:$0xff]   ;;  %v1505_v20 = vcombine.low %v2294_v11, %v2294_v11  ;;  %v1906_v24 = vld [vmem:[#allocation5 + $0x10] sm:$0xff]   ;;  %vm1297_vm2 = vsmask.f32 256  ;;  %s2524_s13 = scalar_lea.vmem [#allocation7], %s1498_s12 }
  0x5f   : > { %v2303_v17 = vld [vmem:[%s2252_s8 + $0x20] sm:$0xf]  ;;  %1731 = vmatpush3.bf16.msra.mxu1 %v1902_v15  ;;  %1661 = vmatpush3.bf16.msra.mxu0 %v1902_v15  ;;  %v1904_v18 = vld [vmem:[#allocation5 + $0x8] sm:$0xff]   ;;  %v2312_v21 = vld [vmem:[%s2252_s8 + $0x24] sm:$0xf]  ;;  %s1632_s28 = sshll.u32 %s2053_s18, 9 }
  0x60   : > { %1732 = vmatprep.subr.bf16.mxu1 %v1903_v16  ;;  %1662 = vmatprep.subr.bf16.mxu0 %v1903_v16  ;;  %v2315_v23 = vld [vmem:[%s2252_s8 + $0x28] sm:$0xf]  ;;  %v1506_v25 = vcombine.low %v2303_v17, %v2303_v17  ;;  %v1507_v26 = vcombine.low %v2312_v21, %v2312_v21  ;;  %v2324_v27 = vld [vmem:[%s2252_s8 + $0x2c] sm:$0xf]  ;;  %v2327_v29 = vld [vmem:[%s2252_s8 + $0x30] sm:$0xf]  ;;  %s2592_s22 = scalar_lea.hbm %s2650_s4, %s1632_s28 }
  0x61   : > { %360 = vrot.lane.b32.xlu0 %v1501_v6, %s2067_s23  ;;  %853 = vrot.lane.b32.xlu1 %v1564_v7, %s2067_s23  ;;  %v1907_v28 = vld [vmem:[#allocation5 + $0x58] sm:$0xff]   ;;  %v1508_v31 = vcombine.low %v2315_v23, %v2315_v23  ;;  %v1509_v32 = vcombine.low %v2324_v27, %v2324_v27  ;;  %v2336_v33 = vld [vmem:[%s2252_s8 + $0x34] sm:$0xf]  ;;  %v1510_v36 = vcombine.low %v2327_v29, %v2327_v29  ;;  %v1911_v40 = vld [vmem:[#allocation5 + $0x68] sm:$0xff]   ;;  %s1395_s6 = sshll.u32 %s2524_s13, 4  ;;  %s1380_s29 = scalar_lea.sflag [#allocation4], %s2248_s30  ;;  %s2594_s6 = int_to_ptr.vmem [resolvable:$true] %s1395_s6 }
  0x62   : > { %v1908_v30 = vld [vmem:[#allocation5 + $0x18] sm:$0xff]   ;;  %v1909_v34 = vld [vmem:[#allocation5 + $0x60] sm:$0xff]   ;;  %v1511_v37 = vcombine.low %v2336_v33, %v2336_v33  ;;  %v1912_v41 = vld [vmem:[#allocation5 + $0x28] sm:$0xff]   ;;  %s1975_s24 = scalar_lea.vmem %s2594_s6, 512  ;;  %s2069_s18 = smov [#allocation7]  }
  0x63   : > { %1733 = vmatpush3.bf16.msra.mxu1 %v1904_v18  ;;  %1663 = vmatpush3.bf16.msra.mxu0 %v1904_v18  ;;  %v1910_v35 = vld [vmem:[#allocation5 + $0x20] sm:$0xff]   ;;  %v2345_v38 = vld [vmem:[%s2252_s8 + $0x38] sm:$0xf]  ;;  %v2348_v39 = vld [vmem:[%s2252_s8 + $0x3c] sm:$0xf]  ;;  %p1976_p4 = scmp.ne.s32.totalorder %s2594_s6, %s1975_s24 }
  0x64   : > { %1734 = vmatprep.subr.bf16.mxu1 %v1905_v22  ;;  %1664 = vmatprep.subr.bf16.mxu0 %v1905_v22  ;;  %v1512_v42 = vcombine.low %v2345_v38, %v2345_v38  ;;  %v1513_v43 = vcombine.low %v2348_v39, %v2348_v39  ;;  %v2357_v44 = vld [vmem:[%s2252_s8 + $0x40] sm:$0xf]  ;;  %v2360_v45 = vld [vmem:[%s2252_s8 + $0x44] sm:$0xf]  ;;  %v2369_v50 = vld [vmem:[%s2252_s8 + $0x48] sm:$0xf] }
  0x65   : > { %362 = vrot.lane.b32.xlu0 %v1502_v12, %s2067_s23  ;;  %364 = vrot.lane.b32.xlu1 %v1503_v13, %s2067_s23  ;;  %v1913_v46 = vld [vmem:[#allocation5 + $0x70] sm:$0xff]   ;;  %v1514_v48 = vcombine.low %v2357_v44, %v2357_v44  ;;  %v1515_v49 = vcombine.low %v2360_v45, %v2360_v45  ;;  %v2372_v51 = vld [vmem:[%s2252_s8 + $0x4c] sm:$0xf]  ;;  %v1516_v54 = vcombine.low %v2369_v50, %v2369_v50  ;;  %vm2476_vm3 = vmand %vm1296_vm1, %vm1297_vm2  ;;  %p1977_p6 = pnand %p1976_p4, %p2191_p10  ;;  %s1979_s8 = sshll.u32 %s2069_s18, 4  ;;  %s1980_s8 = int_to_ptr.vmem [resolvable:$false] %s1979_s8 }
  0x66   : > { %v1914_v47 = vld [vmem:[#allocation5 + $0x30] sm:$0xff]   ;;  %v1915_v52 = vld [vmem:[#allocation5 + $0x78] sm:$0xff]   ;;  %v1517_v55 = vcombine.low %v2372_v51, %v2372_v51  ;;  %s1981_s25 = scalar_lea.vmem %s1980_s8, 1024  ;;  %p1982_p12 = scmp.lt.s32.totalorder %s2594_s6, %s1980_s8 }
  0x67   : > { %1735 = vmatpush3.bf16.msra.mxu1 %v1906_v24  ;;  %1665 = vmatpush3.bf16.msra.mxu0 %v1906_v24  ;;  %v1916_v53 = vld [vmem:[#allocation5 + $0x38] sm:$0xff]   ;;  %p1978_p8 = pneg %p1977_p6  ;;  %p1983_p13 = scmp.lt.s32.totalorder %s1981_s25, %s1975_s24 }
  0x68   : > { %1736 = vmatprep.subr.bf16.mxu1 %v1907_v28  ;;  %1666 = vmatprep.subr.bf16.mxu0 %v1907_v28 }
  0x69   : > { %366 = vrot.lane.b32.xlu0 %v1504_v19, %s2067_s23  ;;  %368 = vrot.lane.b32.xlu1 %v1505_v20, %s2067_s23  ;;  %p1984_p0 = por %p1983_p13, %p1982_p12 }
  0x6b   : > { %1737 = vmatpush3.bf16.msra.mxu1 %v1908_v30  ;;  %1667 = vmatpush3.bf16.msra.mxu0 %v1908_v30  ;;  %p1985_p5 = pnand %p1984_p0, %p1978_p8 }
  0x6c   : > { %1738 = vmatprep.subr.bf16.mxu1 %v1909_v34  ;;  %1668 = vmatprep.subr.bf16.mxu0 %v1909_v34 }
  0x6d   : > { %370 = vrot.lane.b32.xlu0 %v1506_v25, %s2067_s23  ;;  %372 = vrot.lane.b32.xlu1 %v1507_v26, %s2067_s23 }
  0x6f   : > { %1739 = vmatpush3.bf16.msra.mxu1 %v1910_v35  ;;  %1669 = vmatpush3.bf16.msra.mxu0 %v1910_v35 }
  0x70   : > { %1740 = vmatprep.subr.bf16.mxu1 %v1911_v40  ;;  %1670 = vmatprep.subr.bf16.mxu0 %v1911_v40 }
  0x71   : > { %374 = vrot.lane.b32.xlu0 %v1508_v31, %s2067_s23  ;;  %376 = vrot.lane.b32.xlu1 %v1509_v32, %s2067_s23 }
  0x73   : > { %1741 = vmatpush3.bf16.msra.mxu1 %v1912_v41  ;;  %1671 = vmatpush3.bf16.msra.mxu0 %v1912_v41 }
  0x74   : > { %1742 = vmatprep.subr.bf16.mxu1 %v1913_v46  ;;  %1672 = vmatprep.subr.bf16.mxu0 %v1913_v46 }
  0x75   : > { %378 = vrot.lane.b32.xlu0 %v1510_v36, %s2067_s23  ;;  %380 = vrot.lane.b32.xlu1 %v1511_v37, %s2067_s23 }
  0x77   : > { %1743 = vmatpush3.bf16.msra.mxu1 %v1914_v47  ;;  %1673 = vmatpush3.bf16.msra.mxu0 %v1914_v47 }
  0x78   : > { %1744 = vmatprep.subr.bf16.mxu1 %v1915_v52  ;;  %1674 = vmatprep.subr.bf16.mxu0 %v1915_v52 }
  0x79   : > { %382 = vrot.lane.b32.xlu0 %v1512_v42, %s2067_s23  ;;  %384 = vrot.lane.b32.xlu1 %v1513_v43, %s2067_s23 }
  0x7b   : > { %1745 = vmatpush3.bf16.msra.mxu1 %v1916_v53  ;;  %1675 = vmatpush3.bf16.msra.mxu0 %v1916_v53 }
  0x7d   : > { %386 = vrot.lane.b32.xlu0 %v1514_v48, %s2067_s23  ;;  %388 = vrot.lane.b32.xlu1 %v1515_v49, %s2067_s23 }
  0x81   : > { %396 = vrot.lane.b32.xlu0 %v1516_v54, %s2067_s23  ;;  %398 = vrot.lane.b32.xlu1 %v1517_v55, %s2067_s23 }
  0xcf   : > { %v359_v56 = vpop.permute.xlu0 %358  ;;  %v357_v57 = vpop.permute.xlu1 %356 }
  0xd0   : > { %v858_v60 = vsel %vm400_vm0, %v359_v56, %v2269_v2  ;;  %v857_v61 = vsel %vm400_vm0, %v357_v57, %v2263_v0  ;;  %v406_v6 = vsel %vm400_vm0, %v2266_v1, %v359_v56  ;;  %v403_v7 = vsel %vm400_vm0, %v2276_v5, %v357_v57 }
  0xd1   : > { %v1518_v20 = vcombine.low %v403_v7, %v406_v6 }
  0xd3   : > { %v361_v58 = vpop.permute.xlu0 %360  ;;  %v854_v59 = vpop.permute.xlu1 %853 }
  0xd4   : > { %v859_v62 = vsel %vm400_vm0, %v361_v58, %v2285_v8  ;;  %v856_v63 = vsel %vm400_vm0, %v854_v59, %v2266_v1  ;;  %v409_v14 = vsel %vm400_vm0, %v2263_v0, %v361_v58 }
  0xd5   : > { %v1565_v3 = vcombine.low %v856_v63, %v857_v61  ;;  %v1566_v4 = vcombine.low %v858_v60, %v859_v62 }
  0xd7   : > { %968 = vmatprep.mubr.bf16.mxu1 %v1566_v4  ;;  %v363_v12 = vpop.permute.xlu0 %362  ;;  %v365_v13 = vpop.permute.xlu1 %364 }
  0xd8   : > { %v412_v15 = vsel %vm400_vm0, %v2269_v2, %v363_v12  ;;  %v860_v16 = vsel %vm400_vm0, %v363_v12, %v2288_v9  ;;  %969 = vmatmul.mubr.bf16.vlgmr.msra.gmra.mrb[0].mxu1 %v1565_v3  ;;  %v861_v18 = vsel %vm400_vm0, %v365_v13, %v2291_v10  ;;  %v415_v5 = vsel %vm400_vm0, %v2285_v8, %v365_v13 }
  0xd9   : > { %v1567_v1 = vcombine.low %v860_v16, %v861_v18  ;;  %v1519_v19 = vcombine.low %v409_v14, %v412_v15 }
  0xdb   : > { %646 = vmatprep.mubr.bf16.mxu0 %v1519_v19  ;;  %v367_v22 = vpop.permute.xlu0 %366  ;;  %976 = vmatprep.mubr.bf16.mxu1 %v1567_v1  ;;  %v369_v0 = vpop.permute.xlu1 %368 }
  0xdc   : > { %v418_v2 = vsel %vm400_vm0, %v2288_v9, %v367_v22  ;;  %v862_v24 = vsel %vm400_vm0, %v367_v22, %v2294_v11  ;;  %647 = vmatmul.mubr.bf16.vlgmr.msra.gmra.mrb[0].mxu0 %v1518_v20  ;;  %v863_v25 = vsel %vm400_vm0, %v369_v0, %v2303_v17  ;;  %v421_v30 = vsel %vm400_vm0, %v2291_v10, %v369_v0  ;;  %v2466_v0 = vld [vmem:[%s2649_s3] ss:$0 sm:$0xff] }
  0xdd   : > { %v1520_v26 = vcombine.low %v415_v5, %v418_v2  ;;  %v1568_v28 = vcombine.low %v862_v24, %v863_v25 }
  0xdf   : > { %654 = vmatprep.mubr.bf16.mxu0 %v1520_v26  ;;  %v371_v8 = vpop.permute.xlu0 %370  ;;  %v373_v31 = vpop.permute.xlu1 %372 }
  0xe0   : > { %977 = vmatmul.mubr.bf16.gmra.mrb[4].mxu1 %v1566_v4  ;;  %v424_v32 = vsel %vm400_vm0, %v2294_v11, %v371_v8  ;;  %v864_v34 = vsel %vm400_vm0, %v371_v8, %v2312_v21  ;;  %v865_v35 = vsel %vm400_vm0, %v373_v31, %v2315_v23  ;;  %v427_v10 = vsel %vm400_vm0, %v2303_v17, %v373_v31 }
  0xe1   : > { %v1521_v9 = vcombine.low %v421_v30, %v424_v32  ;;  %984 = vmatprep.mubr.bf16.mxu1 %v1568_v28  ;;  %v1569_v37 = vcombine.low %v864_v34, %v865_v35 }
  0xe3   : > { %v375_v36 = vpop.permute.xlu0 %374  ;;  %v377_v41 = vpop.permute.xlu1 %376 }
  0xe4   : > { %655 = vmatmul.mubr.bf16.gmra.mrb[4].mxu0 %v1519_v19  ;;  %v430_v40 = vsel %vm400_vm0, %v2312_v21, %v375_v36  ;;  %v866_v42 = vsel %vm400_vm0, %v375_v36, %v2324_v27  ;;  %v867_v43 = vsel %vm400_vm0, %v377_v41, %v2327_v29  ;;  %v433_v17 = vsel %vm400_vm0, %v2315_v23, %v377_v41 }
  0xe5   : > { %662 = vmatprep.mubr.bf16.mxu0 %v1521_v9  ;;  %v1522_v11 = vcombine.low %v427_v10, %v430_v40  ;;  %v1570_v47 = vcombine.low %v866_v42, %v867_v43 }
  0xe7   : > { %v379_v46 = vpop.permute.xlu0 %378  ;;  %v381_v48 = vpop.permute.xlu1 %380 }
  0xe8   : > { %985 = vmatmul.mubr.bf16.gmra.mrb[8].mxu1 %v1567_v1  ;;  %v436_v21 = vsel %vm400_vm0, %v2324_v27, %v379_v46  ;;  %v868_v52 = vsel %vm400_vm0, %v379_v46, %v2336_v33  ;;  %v869_v53 = vsel %vm400_vm0, %v381_v48, %v2345_v38  ;;  %v439_v23 = vsel %vm400_vm0, %v2327_v29, %v381_v48 }
  0xe9   : > { %992 = vmatprep.mubr.bf16.mxu1 %v1569_v37  ;;  %v1523_v49 = vcombine.low %v433_v17, %v436_v21  ;;  %v1571_v55 = vcombine.low %v868_v52, %v869_v53 }
  0xeb   : > { %v383_v54 = vpop.permute.xlu0 %382  ;;  %v385_v56 = vpop.permute.xlu1 %384 }
  0xec   : > { %663 = vmatmul.mubr.bf16.gmra.mrb[8].mxu0 %v1520_v26  ;;  %v442_v27 = vsel %vm400_vm0, %v2336_v33, %v383_v54  ;;  %v870_v58 = vsel %vm400_vm0, %v383_v54, %v2348_v39  ;;  %v871_v59 = vsel %vm400_vm0, %v385_v56, %v2357_v44  ;;  %v445_v29 = vsel %vm400_vm0, %v2345_v38, %v385_v56 }
  0xed   : > { %670 = vmatprep.mubr.bf16.mxu0 %v1522_v11  ;;  %v1524_v57 = vcombine.low %v439_v23, %v442_v27  ;;  %v1572_v61 = vcombine.low %v870_v58, %v871_v59 }
  0xef   : > { %v387_v60 = vpop.permute.xlu0 %386  ;;  %v389_v62 = vpop.permute.xlu1 %388 }
  0xf0   : > { %993 = vmatmul.mubr.bf16.gmra.mrb[12].mxu1 %v1568_v28  ;;  %v448_v33 = vsel %vm400_vm0, %v2348_v39, %v387_v60  ;;  %v872_v3 = vsel %vm400_vm0, %v387_v60, %v2360_v45  ;;  %v873_v4 = vsel %vm400_vm0, %v389_v62, %v2369_v50  ;;  %v451_v38 = vsel %vm400_vm0, %v2357_v44, %v389_v62 }
  0xf1   : > { %1000 = vmatprep.mubr.bf16.mxu1 %v1570_v47  ;;  %v1525_v63 = vcombine.low %v445_v29, %v448_v33  ;;  %v1573_v7 = vcombine.low %v872_v3, %v873_v4  ;;  %v1574_v44 = vcombine.low %v872_v3, %v872_v3 }
  0xf3   : > { %v397_v6 = vpop.permute.xlu0 %396  ;;  %v399_v14 = vpop.permute.xlu1 %398 }
  0xf4   : > { %671 = vmatmul.mubr.bf16.gmra.mrb[12].mxu0 %v1521_v9  ;;  %v454_v39 = vsel %vm400_vm0, %v2360_v45, %v397_v6  ;;  %v875_v13 = vsel %vm400_vm0, %v397_v6, %v2372_v51  ;;  %v457_v16 = vsel %vm400_vm0, %v2369_v50, %v399_v14  ;;  %v1527_v45 = vcombine.low %v451_v38, %v451_v38  ;;  %v2461_v51 = vld [vmem:[%s2648_s2] ss:$0 sm:$0xff] }
  0xf5   : > { %678 = vmatprep.mubr.bf16.mxu0 %v1523_v49  ;;  %v1526_v12 = vcombine.low %v451_v38, %v454_v39  ;;  %v1575_v15 = vcombine.low %v875_v13, %v875_v13  ;;  %v1528_v18 = vcombine.low %v457_v16, %v457_v16 }
  0xf8   : > { %1001 = vmatmul.mubr.bf16.gmra.mrb[16].mxu1 %v1569_v37 }
  0xf9   : > { %1008 = vmatprep.mubr.bf16.mxu1 %v1571_v55 }
  0xfc   : > { %679 = vmatmul.mubr.bf16.gmra.mrb[16].mxu0 %v1522_v11 }
  0xfd   : > { %686 = vmatprep.mubr.bf16.mxu0 %v1524_v57 }
 0x100   : > { %1009 = vmatmul.mubr.bf16.gmra.mrb[20].mxu1 %v1570_v47 }
 0x101   : > { %1016 = vmatprep.mubr.bf16.mxu1 %v1572_v61 }
 0x104   : > { %687 = vmatmul.mubr.bf16.gmra.mrb[20].mxu0 %v1523_v49 }
 0x105   : > { %694 = vmatprep.mubr.bf16.mxu0 %v1525_v63 }
 0x108   : > { %1017 = vmatmul.mubr.bf16.gmra.mrb[24].mxu1 %v1571_v55 }
 0x109   : > { %1024 = vmatprep.mubr.bf16.mxu1 %v1573_v7 }
 0x10c   : > { %695 = vmatmul.mubr.bf16.gmra.mrb[24].mxu0 %v1524_v57 }
 0x10d   : > { %702 = vmatprep.mubr.bf16.mxu0 %v1526_v12 }
 0x110   : > { %1025 = vmatmul.mubr.bf16.gmra.mrb[28].mxu1 %v1572_v61 }
 0x111   : > { %1032 = vmatprep.mubr.bf16.mxu1 %v1575_v15 }
 0x114   : > { %703 = vmatmul.mubr.bf16.gmra.mrb[28].mxu0 %v1525_v63 }
 0x115   : > { %710 = vmatprep.mubr.bf16.mxu0 %v1528_v18 }
 0x118   : > { %1033 = vmatmul.mubr.bf16.gmra.mrb[32].mxu1 %v1574_v44 }
 0x11c   : > { %711 = vmatmul.mubr.bf16.gmra.mrb[32].mxu0 %v1527_v45 }
 0x1ab   : > { %v1746_v1 = vpop.f32.mrb[0].mxu1 }
 0x1ac   : > { %v1747_v19 = vpop.f32.mrb[1].mxu1 }
 0x1ad   : > { %v1749_v20 = vpop.f32.mrb[2].mxu1 }
 0x1ae   : > { %v1750_v5 = vpop.f32.mrb[3].mxu1 }
 0x1af   : > { %v1751_v22 = vadd.f32 %v1750_v5, %v1749_v20  ;;  %v1676_v50 = vpop.f32.mrb[0].mxu0 }
 0x1b0   : > { %v1677_v2 = vpop.f32.mrb[1].mxu0 }
 0x1b1   : > { %v1041_v24 = vmul.f32 %v1751_v22, %v2461_v51  ;;  %v1679_v25 = vpop.f32.mrb[2].mxu0  ;;  %v2068_v22 = vmov 0  }
 0x1b2   : > { %v1680_v26 = vpop.f32.mrb[3].mxu0 }
 0x1b3   : > { %v1058_v28 = vadd.f32 %v2466_v0, %v1041_v24  ;;  %v1681_v30 = vadd.f32 %v1680_v26, %v1679_v25  ;;  %v1752_v8 = vpop.f32.mrb[4].mxu1 }
 0x1b4   : > { %v1753_v31 = vpop.f32.mrb[5].mxu1 }
 0x1b5   : > { %v1075_v32 = vmax.f32 %v1058_v28, 0.0  ;;  %v725_v9 = vmul.f32 %v1681_v30, %v2461_v51  ;;  %v1754_v34 = vadd.f32 %v1753_v31, %v1752_v8  ;;  %v1755_v35 = vpop.f32.mrb[6].mxu1 }
 0x1b6   : > { %v1756_v36 = vpop.f32.mrb[7].mxu1 }
 0x1b7   : > { %v1616_v37 = vpack.c.bf16 %v1075_v32, %v1075_v32  ;;  %v748_v10 = vadd.f32 %v2466_v0, %v725_v9  ;;  %v1042_v40 = vmul.f32 %v1754_v34, %v2461_v51  ;;  %v1757_v41 = vadd.f32 %v1756_v36, %v1755_v35  ;;  %v1682_v11 = vpop.f32.mrb[4].mxu0 }
 0x1b8   : > { %v1683_v42 = vpop.f32.mrb[5].mxu0 }
 0x1b9   : > { %v1168_v43 = vshrl.u32 %v1616_v37, 16  ;;  %v765_v46 = vmax.f32 %v748_v10, 0.0  ;;  %v1059_v47 = vadd.f32 %v2466_v0, %v1042_v40  ;;  %v1685_v17 = vpop.f32.mrb[6].mxu0  ;;  %v1171_v21 = vshll.u32 %v1616_v37, 16 }
 0x1ba   : > { %v1043_v48 = vmul.f32 %v1757_v41, %v2461_v51  ;;  %v1684_v49 = vadd.f32 %v1683_v42, %v1682_v11  ;;  %v1686_v52 = vpop.f32.mrb[7].mxu0 }
 0x1bb   : > { %v1170_v53 = vrot.slane %v1168_v43, 7  ;;  %v1599_v54 = vpack.c.bf16 %v765_v46, %v765_v46  ;;  %v1076_v55 = vmax.f32 %v1059_v47, 0.0  ;;  %v1687_v23 = vadd.f32 %v1686_v52, %v1685_v17  ;;  %v1758_v27 = vpop.f32.mrb[8].mxu1 }
 0x1bc   : > { %v1060_v57 = vadd.f32 %v2466_v0, %v1043_v48  ;;  %v726_v58 = vmul.f32 %v1684_v49, %v2461_v51  ;;  %v1759_v59 = vpop.f32.mrb[9].mxu1 }
 0x1bd   : > { %v1173_v60 = vor.u32 %v1171_v21, %v1170_v53  ;;  %v1317_v61 = vmax.bf16 %v1616_v37, %v1599_v54  ;;  %v1617_v29 = vpack.c.bf16 %v1076_v55, %v1076_v55  ;;  %v727_v33 = vmul.f32 %v1687_v23, %v2461_v51  ;;  %v1761_v62 = vpop.f32.mrb[10].mxu1 }
 0x1be   : > { %v1077_v63 = vmax.f32 %v1060_v57, 0.0  ;;  %v749_v3 = vadd.f32 %v2466_v0, %v726_v58  ;;  %v1760_v4 = vadd.f32 %v1759_v59, %v1758_v27  ;;  %v1762_v6 = vpop.f32.mrb[11].mxu1 }
 0x1bf   : > { %v1300_v7 = vsel %vm2476_vm3, 0, %v1173_v60  ;;  %v1175_v38 = vshrl.u32 %v1617_v29, 16  ;;  %v1178_v39 = vshll.u32 %v1617_v29, 16  ;;  %v750_v12 = vadd.f32 %v2466_v0, %v727_v33  ;;  %v1688_v13 = vpop.f32.mrb[8].mxu0 }
 0x1c0   : > { %v1334_v14 = vmax.bf16 %v1317_v61, %v1300_v7  ;;  %v1618_v15 = vpack.c.bf16 %v1077_v63, %v1077_v63  ;;  %v766_v16 = vmax.f32 %v749_v3, 0.0  ;;  %v1044_v18 = vmul.f32 %v1760_v4, %v2461_v51  ;;  %v1689_v44 = vpop.f32.mrb[9].mxu0 }
 0x1c1   : > { %v1177_v45 = vrot.slane %v1175_v38, 7  ;;  %v767_v1 = vmax.f32 %v750_v12, 0.0  ;;  %v1763_v19 = vadd.f32 %v1762_v6, %v1761_v62  ;;  %v1690_v20 = vadd.f32 %v1689_v44, %v1688_v13  ;;  %v1691_v5 = vpop.f32.mrb[10].mxu0 }
 0x1c2   : > { %v2488_v50 = vmax.bf16 %v2068_v22, %v1334_v14  ;;  %v1182_v2 = vshrl.u32 %v1618_v15, 16  ;;  %v1185_v24 = vshll.u32 %v1618_v15, 16  ;;  %v1600_v25 = vpack.c.bf16 %v766_v16, %v766_v16  ;;  %v1692_v26 = vpop.f32.mrb[11].mxu0 }
 0x1c3   : > { %v1180_v28 = vor.u32 %v1178_v39, %v1177_v45  ;;  %v1601_v30 = vpack.c.bf16 %v767_v1, %v767_v1  ;;  %v1061_v8 = vadd.f32 %v2466_v0, %v1044_v18  ;;  %v1045_v31 = vmul.f32 %v1763_v19, %v2461_v51  ;;  %v1764_v32 = vpop.f32.mrb[12].mxu1 }
 0x1c4   : > { %v1184_v9 = vrot.slane %v1182_v2, 7  ;;  %v1318_v34 = vmax.bf16 %v1617_v29, %v1600_v25  ;;  %v728_v35 = vmul.f32 %v1690_v20, %v2461_v51  ;;  %v1693_v36 = vadd.f32 %v1692_v26, %v1691_v5  ;;  %v1765_v37 = vpop.f32.mrb[13].mxu1 }
 0x1c5   : > { %v1301_v10 = vsel %vm2476_vm3, 0, %v1180_v28  ;;  %v1319_v40 = vmax.bf16 %v1618_v15, %v1601_v30  ;;  %v1078_v41 = vmax.f32 %v1061_v8, 0.0  ;;  %v1062_v11 = vadd.f32 %v2466_v0, %v1045_v31  ;;  %v1767_v42 = vpop.f32.mrb[14].mxu1 }
 0x1c6   : > { %v1187_v43 = vor.u32 %v1185_v24, %v1184_v9  ;;  %v2496_v46 = vmax.bf16 %v1318_v34, %v1301_v10  ;;  %v751_v47 = vadd.f32 %v2466_v0, %v728_v35  ;;  %v729_v17 = vmul.f32 %v1693_v36, %v2461_v51  ;;  %v1768_v21 = vpop.f32.mrb[15].mxu1 }
 0x1c7   : > { %v1619_v48 = vpack.c.bf16 %v1078_v41, %v1078_v41  ;;  %v1079_v49 = vmax.f32 %v1062_v11, 0.0  ;;  %v1766_v52 = vadd.f32 %v1765_v37, %v1764_v32  ;;  %v1769_v53 = vadd.f32 %v1768_v21, %v1767_v42  ;;  %v1694_v54 = vpop.f32.mrb[12].mxu0 }
 0x1c8   : > { %v1363_v55 = vmax.bf16 %v2488_v50, %v2496_v46  ;;  %v1302_v23 = vsel %vm2476_vm3, 0, %v1187_v43  ;;  %v768_v27 = vmax.f32 %v751_v47, 0.0  ;;  %v752_v57 = vadd.f32 %v2466_v0, %v729_v17  ;;  %v1695_v58 = vpop.f32.mrb[13].mxu0 }
 0x1c9   : > { %v1336_v59 = vmax.bf16 %v1319_v40, %v1302_v23  ;;  %v1189_v60 = vshrl.u32 %v1619_v48, 16  ;;  %v1192_v61 = vshll.u32 %v1619_v48, 16  ;;  %v1620_v29 = vpack.c.bf16 %v1079_v49, %v1079_v49  ;;  %v1697_v33 = vpop.f32.mrb[14].mxu0 }
 0x1ca   : > { %v1602_v62 = vpack.c.bf16 %v768_v27, %v768_v27  ;;  %v769_v63 = vmax.f32 %v752_v57, 0.0  ;;  %v1046_v3 = vmul.f32 %v1766_v52, %v2461_v51  ;;  %v1047_v4 = vmul.f32 %v1769_v53, %v2461_v51  ;;  %v1698_v6 = vpop.f32.mrb[15].mxu0 }
 0x1cb   : > { %v1356_v7 = vmax.bf16 %v1336_v59, %v2496_v46  ;;  %v1191_v38 = vrot.slane %v1189_v60, 7  ;;  %v1196_v39 = vshrl.u32 %v1620_v29, 16  ;;  %v1199_v12 = vshll.u32 %v1620_v29, 16  ;;  %v1770_v13 = vpop.f32.mrb[16].mxu1 }
 0x1cc   : > { %v1320_v14 = vmax.bf16 %v1619_v48, %v1602_v62  ;;  %v1603_v15 = vpack.c.bf16 %v769_v63, %v769_v63  ;;  %v1063_v16 = vadd.f32 %v2466_v0, %v1046_v3  ;;  %v1064_v18 = vadd.f32 %v2466_v0, %v1047_v4  ;;  %v1771_v44 = vpop.f32.mrb[17].mxu1 }
 0x1cd   : > { %v1194_v45 = vor.u32 %v1192_v61, %v1191_v38  ;;  %v1198_v1 = vrot.slane %v1196_v39, 7  ;;  %v1696_v19 = vadd.f32 %v1695_v58, %v1694_v54  ;;  %v1699_v20 = vadd.f32 %v1698_v6, %v1697_v33  ;;  %v1773_v5 = vpop.f32.mrb[18].mxu1 }
 0x1ce   : > { %v1321_v22 = vmax.bf16 %v1620_v29, %v1603_v15  ;;  %v1080_v50 = vmax.f32 %v1063_v16, 0.0  ;;  %v1081_v2 = vmax.f32 %v1064_v18, 0.0  ;;  %v1772_v24 = vadd.f32 %v1771_v44, %v1770_v13  ;;  %v1774_v25 = vpop.f32.mrb[19].mxu1 }
 0x1cf   : > { %v1201_v26 = vor.u32 %v1199_v12, %v1198_v1  ;;  %v1303_v28 = vsel %vm2476_vm3, 0, %v1194_v45  ;;  %v730_v30 = vmul.f32 %v1696_v19, %v2461_v51  ;;  %v731_v8 = vmul.f32 %v1699_v20, %v2461_v51  ;;  %v1700_v31 = vpop.f32.mrb[16].mxu0 }
 0x1d0   : > { %v1337_v32 = vmax.bf16 %v1320_v14, %v1303_v28  ;;  %v1621_v9 = vpack.c.bf16 %v1080_v50, %v1080_v50  ;;  %v1622_v34 = vpack.c.bf16 %v1081_v2, %v1081_v2  ;;  %v1048_v35 = vmul.f32 %v1772_v24, %v2461_v51  ;;  %v1701_v36 = vpop.f32.mrb[17].mxu0 }
 0x1d1   : > { %v1304_v37 = vsel %vm2476_vm3, 0, %v1201_v26  ;;  %v753_v10 = vadd.f32 %v2466_v0, %v730_v30  ;;  %v754_v40 = vadd.f32 %v2466_v0, %v731_v8  ;;  %v1775_v41 = vadd.f32 %v1774_v25, %v1773_v5  ;;  %v1703_v11 = vpop.f32.mrb[18].mxu0 }
 0x1d2   : > { %v1364_v42 = vmax.bf16 %v1356_v7, %v1337_v32  ;;  %v1338_v43 = vmax.bf16 %v1321_v22, %v1304_v37  ;;  %v1203_v46 = vshrl.u32 %v1621_v9, 16  ;;  %v1206_v47 = vshll.u32 %v1621_v9, 16  ;;  %v1704_v17 = vpop.f32.mrb[19].mxu0 }
 0x1d3   : > { %v1210_v21 = vshrl.u32 %v1622_v34, 16  ;;  %v1213_v48 = vshll.u32 %v1622_v34, 16  ;;  %v770_v49 = vmax.f32 %v753_v10, 0.0  ;;  %v771_v52 = vmax.f32 %v754_v40, 0.0  ;;  %v1776_v53 = vpop.f32.mrb[20].mxu1 }
 0x1d4   : > { %v1653_v54 = vcombine.low %v1363_v55, %v1364_v42  ;;  %v1357_v23 = vmax.bf16 %v1338_v43, %v1337_v32  ;;  %v1205_v27 = vrot.slane %v1203_v46, 7  ;;  %v1065_v57 = vadd.f32 %v2466_v0, %v1048_v35  ;;  %v1777_v58 = vpop.f32.mrb[21].mxu1 }
 0x1d5   : > { %v1212_v59 = vrot.slane %v1210_v21, 7  ;;  %v1604_v60 = vpack.c.bf16 %v770_v49, %v770_v49  ;;  %v1605_v61 = vpack.c.bf16 %v771_v52, %v771_v52  ;;  %v1049_v29 = vmul.f32 %v1775_v41, %v2461_v51  ;;  %v1779_v33 = vpop.f32.mrb[22].mxu1 }
 0x1d6   : > { %1637 = vst [vmem:[%s2524_s13] sm:$0xff] %v1653_v54   ;;  %v1208_v62 = vor.u32 %v1206_v47, %v1205_v27  ;;  %v1082_v63 = vmax.f32 %v1065_v57, 0.0  ;;  %v1702_v3 = vadd.f32 %v1701_v36, %v1700_v31  ;;  %v1705_v55 = vadd.f32 %v1704_v17, %v1703_v11  ;;  %v1780_v4 = vpop.f32.mrb[23].mxu1 }
 0x1d7   : > { %v1215_v6 = vor.u32 %v1213_v48, %v1212_v59  ;;  %v1322_v7 = vmax.bf16 %v1621_v9, %v1604_v60  ;;  %v1323_v38 = vmax.bf16 %v1622_v34, %v1605_v61  ;;  %v1066_v39 = vadd.f32 %v2466_v0, %v1049_v29  ;;  %v1706_v12 = vpop.f32.mrb[20].mxu0 }
 0x1d8   : > { %v1305_v13 = vsel %vm2476_vm3, 0, %v1208_v62  ;;  %v1623_v14 = vpack.c.bf16 %v1082_v63, %v1082_v63  ;;  %v732_v15 = vmul.f32 %v1702_v3, %v2461_v51  ;;  %v733_v16 = vmul.f32 %v1705_v55, %v2461_v51  ;;  %v1707_v18 = vpop.f32.mrb[21].mxu0 }
 0x1d9   : > { %v1339_v44 = vmax.bf16 %v1322_v7, %v1305_v13  ;;  %v1306_v45 = vsel %vm2476_vm3, 0, %v1215_v6  ;;  %v1083_v1 = vmax.f32 %v1066_v39, 0.0  ;;  %v1778_v19 = vadd.f32 %v1777_v58, %v1776_v53  ;;  %v1709_v20 = vpop.f32.mrb[22].mxu0 }
 0x1da   : > { %v1340_v5 = vmax.bf16 %v1323_v38, %v1306_v45  ;;  %v1217_v22 = vshrl.u32 %v1623_v14, 16  ;;  %v1220_v50 = vshll.u32 %v1623_v14, 16  ;;  %v755_v2 = vadd.f32 %v2466_v0, %v732_v15  ;;  %v1710_v24 = vpop.f32.mrb[23].mxu0 }
 0x1db   : > { %v2535_v25 = vmax.bf16 %v1357_v23, %v1339_v44  ;;  %v1624_v26 = vpack.c.bf16 %v1083_v1, %v1083_v1  ;;  %v756_v28 = vadd.f32 %v2466_v0, %v733_v16  ;;  %v1050_v30 = vmul.f32 %v1778_v19, %v2461_v51  ;;  %v1782_v8 = vpop.f32.mrb[24].mxu1 }
 0x1dc   : > { %v1358_v31 = vmax.bf16 %v1340_v5, %v1339_v44  ;;  %v1219_v32 = vrot.slane %v1217_v22, 7  ;;  %v772_v9 = vmax.f32 %v755_v2, 0.0  ;;  %v1781_v34 = vadd.f32 %v1780_v4, %v1779_v33  ;;  %v1783_v35 = vpop.f32.mrb[25].mxu1 }
 0x1dd   : > { %v1224_v36 = vshrl.u32 %v1624_v26, 16  ;;  %v1227_v37 = vshll.u32 %v1624_v26, 16  ;;  %v773_v10 = vmax.f32 %v756_v28, 0.0  ;;  %v1067_v40 = vadd.f32 %v2466_v0, %v1050_v30  ;;  %v1785_v41 = vpop.f32.mrb[26].mxu1 }
 0x1de   : > { %v1222_v11 = vor.u32 %v1220_v50, %v1219_v32  ;;  %v1606_v42 = vpack.c.bf16 %v772_v9, %v772_v9  ;;  %v1051_v43 = vmul.f32 %v1781_v34, %v2461_v51  ;;  %v1708_v46 = vadd.f32 %v1707_v18, %v1706_v12  ;;  %v1786_v47 = vpop.f32.mrb[27].mxu1 }
 0x1df   : > { %v1226_v17 = vrot.slane %v1224_v36, 7  ;;  %v1607_v21 = vpack.c.bf16 %v773_v10, %v773_v10  ;;  %v1084_v48 = vmax.f32 %v1067_v40, 0.0  ;;  %v1711_v49 = vadd.f32 %v1710_v24, %v1709_v20  ;;  %v1712_v52 = vpop.f32.mrb[24].mxu0 }
 0x1e0   : > { %v1307_v53 = vsel %vm2476_vm3, 0, %v1222_v11  ;;  %v1324_v54 = vmax.bf16 %v1623_v14, %v1606_v42  ;;  %v1068_v23 = vadd.f32 %v2466_v0, %v1051_v43  ;;  %v734_v27 = vmul.f32 %v1708_v46, %v2461_v51  ;;  %v1713_v57 = vpop.f32.mrb[25].mxu0 }
 0x1e1   : > { %v1229_v58 = vor.u32 %v1227_v37, %v1226_v17  ;;  %v1325_v59 = vmax.bf16 %v1624_v26, %v1607_v21  ;;  %v1625_v60 = vpack.c.bf16 %v1084_v48, %v1084_v48  ;;  %v735_v61 = vmul.f32 %v1711_v49, %v2461_v51  ;;  %v1715_v29 = vpop.f32.mrb[26].mxu0 }
 0x1e2   : > { %v1341_v33 = vmax.bf16 %v1324_v54, %v1307_v53  ;;  %v1085_v62 = vmax.f32 %v1068_v23, 0.0  ;;  %v757_v63 = vadd.f32 %v2466_v0, %v734_v27  ;;  %v1784_v3 = vadd.f32 %v1783_v35, %v1782_v8  ;;  %v1716_v55 = vpop.f32.mrb[27].mxu0 }
 0x1e3   : > { %v1308_v4 = vsel %vm2476_vm3, 0, %v1229_v58  ;;  %v1231_v6 = vshrl.u32 %v1625_v60, 16  ;;  %v1234_v7 = vshll.u32 %v1625_v60, 16  ;;  %v758_v38 = vadd.f32 %v2466_v0, %v735_v61  ;;  %v1788_v39 = vpop.f32.mrb[28].mxu1 }
 0x1e4   : > { %v1366_v12 = vmax.bf16 %v1358_v31, %v1341_v33  ;;  %v1342_v13 = vmax.bf16 %v1325_v59, %v1308_v4  ;;  %v1626_v14 = vpack.c.bf16 %v1085_v62, %v1085_v62  ;;  %v774_v15 = vmax.f32 %v757_v63, 0.0  ;;  %v1789_v16 = vpop.f32.mrb[29].mxu1 }
 0x1e5   : > { %v1233_v18 = vrot.slane %v1231_v6, 7  ;;  %v775_v44 = vmax.f32 %v758_v38, 0.0  ;;  %v1052_v45 = vmul.f32 %v1784_v3, %v2461_v51  ;;  %v1787_v1 = vadd.f32 %v1786_v47, %v1785_v41  ;;  %v1791_v19 = vpop.f32.mrb[30].mxu1 }
 0x1e6   : > { %v1654_v20 = vcombine.low %v2535_v25, %v1366_v12  ;;  %v1359_v5 = vmax.bf16 %v1342_v13, %v1341_v33  ;;  %v1238_v22 = vshrl.u32 %v1626_v14, 16  ;;  %v1241_v50 = vshll.u32 %v1626_v14, 16  ;;  %v1792_v2 = vpop.f32.mrb[31].mxu1 }
 0x1e7   : > { %v1236_v24 = vor.u32 %v1234_v7, %v1233_v18  ;;  %v1608_v26 = vpack.c.bf16 %v774_v15, %v774_v15  ;;  %v1609_v28 = vpack.c.bf16 %v775_v44, %v775_v44  ;;  %v1069_v30 = vadd.f32 %v2466_v0, %v1052_v45  ;;  %v1718_v8 = vpop.f32.mrb[28].mxu0 }
 0x1e8   : > { %1655 = vst [vmem:[%s2524_s13 + $0x8] sm:$0xff] %v1654_v20   ;;  %v1240_v31 = vrot.slane %v1238_v22, 7  ;;  %v1053_v32 = vmul.f32 %v1787_v1, %v2461_v51  ;;  %v1714_v9 = vadd.f32 %v1713_v57, %v1712_v52  ;;  %v1717_v34 = vadd.f32 %v1716_v55, %v1715_v29  ;;  %v1719_v35 = vpop.f32.mrb[29].mxu0 }
 0x1e9   : > { %v1309_v25 = vsel %vm2476_vm3, 0, %v1236_v24  ;;  %v1326_v36 = vmax.bf16 %v1625_v60, %v1608_v26  ;;  %v1327_v37 = vmax.bf16 %v1626_v14, %v1609_v28  ;;  %v1086_v10 = vmax.f32 %v1069_v30, 0.0  ;;  %v1721_v40 = vpop.f32.mrb[30].mxu0 }
 0x1ea   : > { %v1243_v41 = vor.u32 %v1241_v50, %v1240_v31  ;;  %v1070_v11 = vadd.f32 %v2466_v0, %v1053_v32  ;;  %v736_v42 = vmul.f32 %v1714_v9, %v2461_v51  ;;  %v737_v43 = vmul.f32 %v1717_v34, %v2461_v51  ;;  %v1722_v46 = vpop.f32.mrb[31].mxu0 }
 0x1eb   : > { %v1343_v47 = vmax.bf16 %v1326_v36, %v1309_v25  ;;  %v1627_v17 = vpack.c.bf16 %v1086_v10, %v1086_v10  ;;  %v1790_v21 = vadd.f32 %v1789_v16, %v1788_v39  ;;  %v1793_v48 = vadd.f32 %v1792_v2, %v1791_v19  ;;  %v1794_v49 = vpop.f32.mrb[32].mxu1 }
 0x1ec   : > { %v1310_v52 = vsel %vm2476_vm3, 0, %v1243_v41  ;;  %v1087_v53 = vmax.f32 %v1070_v11, 0.0  ;;  %v759_v54 = vadd.f32 %v2466_v0, %v736_v42  ;;  %v760_v23 = vadd.f32 %v2466_v0, %v737_v43  ;;  %v1795_v27 = vpop.f32.mrb[33].mxu1 }
 0x1ed   : > { %v1367_v57 = vmax.bf16 %v1359_v5, %v1343_v47  ;;  %v1344_v58 = vmax.bf16 %v1327_v37, %v1310_v52  ;;  %v1245_v59 = vshrl.u32 %v1627_v17, 16  ;;  %v1248_v60 = vshll.u32 %v1627_v17, 16  ;;  %v1797_v61 = vpop.f32.mrb[34].mxu1 }
 0x1ee   : > { %v1628_v29 = vpack.c.bf16 %v1087_v53, %v1087_v53  ;;  %v776_v33 = vmax.f32 %v759_v54, 0.0  ;;  %v777_v62 = vmax.f32 %v760_v23, 0.0  ;;  %v1054_v63 = vmul.f32 %v1790_v21, %v2461_v51  ;;  %v1798_v3 = vpop.f32.mrb[35].mxu1 }
 0x1ef   : > { %v1360_v55 = vmax.bf16 %v1344_v58, %v1343_v47  ;;  %v1247_v4 = vrot.slane %v1245_v59, 7  ;;  %v1055_v6 = vmul.f32 %v1793_v48, %v2461_v51  ;;  %v1720_v7 = vadd.f32 %v1719_v35, %v1718_v8  ;;  %v1724_v38 = vpop.f32.mrb[32].mxu0 }
 0x1f0   : > { %v1252_v39 = vshrl.u32 %v1628_v29, 16  ;;  %v1255_v12 = vshll.u32 %v1628_v29, 16  ;;  %v1610_v13 = vpack.c.bf16 %v776_v33, %v776_v33  ;;  %v1611_v14 = vpack.c.bf16 %v777_v62, %v777_v62  ;;  %v1725_v15 = vpop.f32.mrb[33].mxu0 }
 0x1f1   : > { %v1250_v16 = vor.u32 %v1248_v60, %v1247_v4  ;;  %v1071_v18 = vadd.f32 %v2466_v0, %v1054_v63  ;;  %v1072_v44 = vadd.f32 %v2466_v0, %v1055_v6  ;;  %v738_v45 = vmul.f32 %v1720_v7, %v2461_v51  ;;  %v1727_v1 = vpop.f32.mrb[34].mxu0 }
 0x1f2   : > { %v1254_v19 = vrot.slane %v1252_v39, 7  ;;  %v1328_v20 = vmax.bf16 %v1627_v17, %v1610_v13  ;;  %v1329_v5 = vmax.bf16 %v1628_v29, %v1611_v14  ;;  %v1723_v22 = vadd.f32 %v1722_v46, %v1721_v40  ;;  %v1728_v50 = vpop.f32.mrb[35].mxu0 }
 0x1f3   : > { %v1311_v2 = vsel %vm2476_vm3, 0, %v1250_v16  ;;  %v1088_v24 = vmax.f32 %v1071_v18, 0.0  ;;  %v1089_v26 = vmax.f32 %v1072_v44, 0.0  ;;  %v761_v28 = vadd.f32 %v2466_v0, %v738_v45 }
 0x1f4   : > { %v1257_v30 = vor.u32 %v1255_v12, %v1254_v19  ;;  %v1345_v8 = vmax.bf16 %v1328_v20, %v1311_v2  ;;  %v739_v31 = vmul.f32 %v1723_v22, %v2461_v51  ;;  %v1796_v32 = vadd.f32 %v1795_v27, %v1794_v49 }
 0x1f5   : > { %v1629_v9 = vpack.c.bf16 %v1088_v24, %v1088_v24  ;;  %v1630_v34 = vpack.c.bf16 %v1089_v26, %v1089_v26  ;;  %v778_v35 = vmax.f32 %v761_v28, 0.0  ;;  %v1726_v25 = vadd.f32 %v1725_v15, %v1724_v38 }
 0x1f6   : > { %v1368_v36 = vmax.bf16 %v1360_v55, %v1345_v8  ;;  %v1312_v37 = vsel %vm2476_vm3, 0, %v1257_v30  ;;  %v762_v10 = vadd.f32 %v2466_v0, %v739_v31  ;;  %v1056_v40 = vmul.f32 %v1796_v32, %v2461_v51 }
 0x1f7   : > { %v1346_v41 = vmax.bf16 %v1329_v5, %v1312_v37  ;;  %v1259_v11 = vshrl.u32 %v1629_v9, 16  ;;  %v1262_v42 = vshll.u32 %v1629_v9, 16  ;;  %v1266_v43 = vshrl.u32 %v1630_v34, 16 }
 0x1f8   : > { %v1656_v46 = vcombine.low %v1367_v57, %v1368_v36  ;;  %v1269_v47 = vshll.u32 %v1630_v34, 16  ;;  %v1612_v17 = vpack.c.bf16 %v778_v35, %v778_v35  ;;  %v779_v21 = vmax.f32 %v762_v10, 0.0 }
 0x1f9   : > { %v1361_v48 = vmax.bf16 %v1346_v41, %v1345_v8  ;;  %v1261_v49 = vrot.slane %v1259_v11, 7  ;;  %v1268_v52 = vrot.slane %v1266_v43, 7  ;;  %v1073_v53 = vadd.f32 %v2466_v0, %v1056_v40 }
 0x1fa   : > { %1657 = vst [vmem:[%s2524_s13 + $0x10] sm:$0xff] %v1656_v46   ;;  %v1330_v54 = vmax.bf16 %v1629_v9, %v1612_v17  ;;  %v1613_v23 = vpack.c.bf16 %v779_v21, %v779_v21  ;;  %v740_v27 = vmul.f32 %v1726_v25, %v2461_v51 }
 0x1fb   : > { %v1264_v58 = vor.u32 %v1262_v42, %v1261_v49  ;;  %v1271_v59 = vor.u32 %v1269_v47, %v1268_v52  ;;  %v1090_v60 = vmax.f32 %v1073_v53, 0.0 }
 0x1fc   : > { %v1331_v61 = vmax.bf16 %v1630_v34, %v1613_v23  ;;  %v763_v29 = vadd.f32 %v2466_v0, %v740_v27 }
 0x1fd   : > { %v1313_v57 = vsel %vm2476_vm3, 0, %v1264_v58  ;;  %v1314_v33 = vsel %vm2476_vm3, 0, %v1271_v59  ;;  %v1631_v62 = vpack.c.bf16 %v1090_v60, %v1090_v60 }
 0x1fe   : > { %v1347_v63 = vmax.bf16 %v1330_v54, %v1313_v57  ;;  %v1348_v3 = vmax.bf16 %v1331_v61, %v1314_v33  ;;  %v780_v55 = vmax.f32 %v763_v29, 0.0 }
 0x1ff   : > { %v1273_v4 = vshrl.u32 %v1631_v62, 16  ;;  %v1276_v0 = vshll.u32 %v1631_v62, 16 }
 0x200   : > { %v1369_v51 = vmax.bf16 %v1361_v48, %v1347_v63  ;;  %v1362_v6 = vmax.bf16 %v1348_v3, %v1347_v63  ;;  %v1614_v7 = vpack.c.bf16 %v780_v55, %v780_v55 }
 0x201   : > { %v1275_v38 = vrot.slane %v1273_v4, 7 }
 0x202   : > { %v1332_v39 = vmax.bf16 %v1631_v62, %v1614_v7 }
 0x203   : > { %v1278_v12 = vor.u32 %v1276_v0, %v1275_v38 }
 0x205   : > { %v1315_v13 = vsel %vm2476_vm3, 0, %v1278_v12 }
 0x206   : > { %v1349_v14 = vmax.bf16 %v1332_v39, %v1315_v13 }
 0x208   : > { %v1370_v15 = vmax.bf16 %v1362_v6, %v1349_v14 }
 0x20a   : > { %v1658_v16 = vcombine.low %v1369_v51, %v1370_v15 }
 0x20c   : > { %1659 = vst [vmem:[%s2524_s13 + $0x18] sm:$0xff] %v1658_v16  }
 0x20d   : > { %1988 = shalt.err (!%p1985_p5)
}
 0x20e   : > { %s1989_s27 = scalar_lea.hbm %s2592_s22, 512  ;;  %s1993_s12 = scalar_lea.hbm %s2650_s4, 1024 }
 0x20f   : > { %p1990_p9 = scmp.ne.s32.totalorder %s2592_s22, %s1989_s27  ;;  %p1994_p3 = scmp.lt.u32.totalorder %s2592_s22, %s2650_s4 }
 0x210   : > { %p1995_p7 = scmp.lt.u32.totalorder %s1993_s12, %s1989_s27  ;;  %p1997_p4 = scmp.lt.u32.totalorder %s1989_s27, %s2592_s22 }
 0x211   : > { %p1991_p1 = pnand %p1990_p9, %p2191_p10 }
 0x212   : > { %p1996_p11 = por %p1995_p7, %p1994_p3 }
 0x213   : > { %p1992_p2 = pneg %p1991_p1 }
 0x214   : > { %p1998_p6 = por %p1997_p4, %p1996_p11 }
 0x216   : > { %p1999_p8 = pnand %p1998_p6, %p1992_p2 }
 0x218   : > { %2002 = shalt.err (!%p1999_p8)
}
 0x219   : > { %s2070_s9 = smov 4  }
 0x21a   : > { %1809 = dma.vmem_to_hbm [thread:$0]  (%p2191_p10), %s2594_s6, 512, %s2592_s22, %s1380_s29, %s2067_s23, %s2067_s23, %s2070_s9  }
 0x21b PF: > { %s1410_s11 = sand.u32 1, %s2041_s15   ;;  %p2669_p12 = scmp.ne.s32.totalorder %s2658_s26, 0 }
 0x21c   : > { %p2670_p13 = scmp.ge.s32.totalorder %s2061_s20, 2  ;;  %s1411_s24 = scalar_lea.sflag [#allocation4], %s1410_s11 }
 0x21e   : > { %p1820_p0 = pnand %p2670_p13, %p2669_p12 }
 0x220   : > { %2036 = dma.done.wait (!%p1820_p0), %s1411_s24, 512  }
 0x221   : > { %2038 = vsyncadd (!%p1820_p0), %s1411_s24, 4294966784  ;;  %s21_s20 = sadd.s32 1, %s2061_s20   ;;  %s2671_s15 = smov %s2045_s16 }
 0x222   : > { %p18_p5 = scmp.ge.s32.totalorder %s21_s20, 4   ;;  %s2672_s16 = smov %s2049_s17 }
 0x223   : > { %s2673_s17 = smov %s2200_s10  ;;  %s2674_s18 = smov %s2057_s19 }
 0x224   : > { %s2675_s19 = smov %s2677_s5  ;;  %20 = sbr.rel (!%p18_p5) target bundleno = 7 (0x7), region = 85 }
 0x22b   :  { %1416 = vsyncpa [#allocation3], 1 }
 0x22c   :  { %1418 = vsyncpa [#allocation3 + $0x1], 1 }
 0x22d   :  { %1419 = vsyncpa [#allocation6], 1 }
 0x22e   :  { %1420 = vsyncpa [#allocation4], 1 }
 0x22f   :  { %1422 = vsyncpa [#allocation4 + $0x1], 1 }

</bundles_post_ra>
